<compile_context>
chip_gen: v5e
topology: v5e:2x2
jax: 0.10.0
libtpu: 0.0.40
codegen_flags: <defaults>
</compile_context>

<pallas_src>
import functools

import jax
import jax.numpy as jnp
from jax.experimental import pallas as pl
from jax.experimental.pallas import tpu as pltpu


def _block_kernel(x_ref,
                  ln1_g_ref, ln1_b_ref,
                  wqkv_ref, wproj_ref, bproj_ref,
                  ln2_g_ref, ln2_b_ref,
                  w1_ref, b1_ref, w2_ref, b2_ref,
                  o_ref,
                  *, n_heads):
    b_block, T, C = x_ref.shape
    hs = C // n_heads
    R = b_block * T
    eps = 1e-5   # PyTorch nn.LayerNorm default

    x = x_ref[...].reshape(R, C).astype(jnp.float32)           # (R, C) f32

    # ---------------- LayerNorm 1 (f32) ----------------
    mu1 = jnp.mean(x, axis=-1, keepdims=True)
    xc1 = x - mu1
    var1 = jnp.mean(xc1 * xc1, axis=-1, keepdims=True)
    h1 = xc1 * jax.lax.rsqrt(var1 + eps)
    h1 = h1 * ln1_g_ref[...] + ln1_b_ref[...]                   # (R, C)

    # ---------------- Fused QKV projection (one MXU matmul) ----------------
    # wqkv columns: [ K(all heads, pre-scaled by C**-0.5) | Q | V ], bf16.
    qkv = jnp.dot(h1.astype(jnp.bfloat16), wqkv_ref[...],
                  preferred_element_type=jnp.float32)           # (R, 3C) f32

    # ---------------- Multi-head causal self-attention ----------------
    # Faithful to the reference: scores = k @ q^T (scale folded into K),
    # causal mask via tril, softmax over last dim, then wei @ v.
    row = jax.lax.broadcasted_iota(jnp.int32, (T, T), 0)
    col = jax.lax.broadcasted_iota(jnp.int32, (T, T), 1)
    causal = col <= row                                         # tril mask

    attn_rows = []
    for b in range(b_block):                                    # static loops
        r0 = b * T
        acc = None                                              # (T, C) f32
        for h in range(n_heads):
            c0 = h * hs
            k = qkv[r0:r0 + T, c0:c0 + hs].astype(jnp.bfloat16)
            q = qkv[r0:r0 + T, C + c0:C + c0 + hs].astype(jnp.bfloat16)
            v = qkv[r0:r0 + T, 2 * C + c0:2 * C + c0 + hs].astype(jnp.bfloat16)

            # scores = k @ q^T via dot_general (no explicit transpose)
            s = jax.lax.dot_general(k, q, (((1,), (1,)), ((), ())),
                                    preferred_element_type=jnp.float32)
            s = jnp.where(causal, s, -jnp.inf)
            m = jnp.max(s, axis=-1, keepdims=True)
            p = jnp.exp(s - m)                                  # unnormalized
            denom = jnp.sum(p, axis=-1, keepdims=True)

            o_h = jnp.dot(p.astype(jnp.bfloat16), v,
                          preferred_element_type=jnp.float32)   # (T, hs)
            # deferred softmax normalization on the small (T, hs) tile
            o_h = o_h * pl.reciprocal(denom, approx=True)
            # (attention dropout: identity in eval mode)

            # Fold the output projection in per head (static wproj slice) and
            # accumulate in f32 -- replaces concat(heads) + one big matmul.
            contrib = jnp.dot(o_h.astype(jnp.bfloat16),
                              wproj_ref[c0:c0 + hs, :],
                              preferred_element_type=jnp.float32)  # (T, C)
            acc = contrib if acc is None else acc + contrib
        attn_rows.append(acc)

    attn = attn_rows[0] if b_block == 1 else jnp.concatenate(attn_rows, axis=0)
    x = x + attn + bproj_ref[...]                               # residual 1

    # ---------------- LayerNorm 2 (f32) ----------------
    mu2 = jnp.mean(x, axis=-1, keepdims=True)
    xc2 = x - mu2
    var2 = jnp.mean(xc2 * xc2, axis=-1, keepdims=True)
    h2 = xc2 * jax.lax.rsqrt(var2 + eps)
    h2 = h2 * ln2_g_ref[...] + ln2_b_ref[...]

    # ---------------- FeedForward (bf16 matmuls, f32 accumulation) ----------
    ff = jnp.dot(h2.astype(jnp.bfloat16), w1_ref[...],
                 preferred_element_type=jnp.float32) + b1_ref[...]
    ff = jnp.maximum(ff, 0.0)                                   # ReLU
    ff = jnp.dot(ff.astype(jnp.bfloat16), w2_ref[...],
                 preferred_element_type=jnp.float32) + b2_ref[...]
    # (FFN dropout: identity in eval mode)

    o_ref[...] = (x + ff).reshape(b_block, T, C).astype(o_ref.dtype)


def transformer_block(x, packed, *, b_block=1):
    """x: (B, T, C) float32.  packed: output of pack_params()."""
    B, T, C = x.shape
    n_heads = packed["n_heads"]
    assert B % b_block == 0, "b_block must divide B"
    assert C % n_heads == 0

    weight_names = ["ln1_g", "ln1_b", "wqkv", "wproj", "bproj",
                    "ln2_g", "ln2_b", "w1", "b1", "w2", "b2"]
    weights = [packed[n] for n in weight_names]

    # Grid-invariant (replicated) weight blocks.  NOTE: for large models on
    # v7x (64 MiB VMEM), consider pipeline_mode=pl.Buffered(1) and an explicit
    # vmem_limit_bytes; unnecessary at these shapes.
    def const_spec(a):
        nd = a.ndim
        return pl.BlockSpec(a.shape, lambda i, _nd=nd: (0,) * _nd)

    hs = C // n_heads
    flops = (2 * B * T * C * 3 * C              # fused qkv projection
             + 4 * B * n_heads * T * T * hs     # scores + wei@v
             + 2 * B * T * C * C                # per-head output projection
             + 4 * B * T * C * 4 * C)           # ffn (both linears)
    transcendentals = B * n_heads * T * T + 2 * B * T
    bytes_accessed = (2 * x.size * x.dtype.itemsize
                      + sum(w.size * w.dtype.itemsize for w in weights))

    kernel = functools.partial(_block_kernel, n_heads=n_heads)

    return pl.pallas_call(
        kernel,
        out_shape=jax.ShapeDtypeStruct((B, T, C), x.dtype),
        grid=(B // b_block,),
        in_specs=[pl.BlockSpec((b_block, T, C), lambda i: (i, 0, 0))]
                 + [const_spec(w) for w in weights],
        out_specs=pl.BlockSpec((b_block, T, C), lambda i: (i, 0, 0)),
        compiler_params=pltpu.CompilerParams(
            dimension_semantics=("parallel",)),
        cost_estimate=pl.CostEstimate(flops=int(flops),
                                      transcendentals=int(transcendentals),
                                      bytes_accessed=int(bytes_accessed)),
    )(x, *weights)


def init_params(key, n_embed, n_heads):
    """PyTorch-style f32 parameters (pre-transposed for row-major matmul)."""
    head_size = n_embed // n_heads
    ks = jax.random.split(key, 9)

    def lin(k, fan_in, shape):
        bound = 1.0 / (fan_in ** 0.5)
        return jax.random.uniform(k, shape, jnp.float32, -bound, bound)

    return {
        # LayerNorm params (PyTorch default init: weight=1, bias=0)
        "ln1_g": jnp.ones((1, n_embed), jnp.float32),
        "ln1_b": jnp.zeros((1, n_embed), jnp.float32),
        "ln2_g": jnp.ones((1, n_embed), jnp.float32),
        "ln2_b": jnp.zeros((1, n_embed), jnp.float32),
        # per-head projections, pre-transposed: (n_heads, C, head_size)
        "wk": lin(ks[0], n_embed, (n_heads, n_embed, head_size)),
        "wq": lin(ks[1], n_embed, (n_heads, n_embed, head_size)),
        "wv": lin(ks[2], n_embed, (n_heads, n_embed, head_size)),
        # output projection (C, C) pre-transposed, bias (1, C)
        "wproj": lin(ks[3], n_embed, (n_embed, n_embed)),
        "bproj": lin(ks[4], n_embed, (1, n_embed)),
        # feed-forward, pre-transposed
        "w1": lin(ks[5], n_embed, (n_embed, 4 * n_embed)),
        "b1": lin(ks[6], n_embed, (1, 4 * n_embed)),
        "w2": lin(ks[7], 4 * n_embed, (4 * n_embed, n_embed)),
        "b2": lin(ks[8], 4 * n_embed, (1, n_embed)),
    }


def pack_params(params):
    """One-time packing of model params into kernel-ready arrays.

    * wk/wq/wv (H, C, hs) -> single (C, 3C) bf16 matrix; head h occupies
      columns h*hs:(h+1)*hs inside each C-wide third.
    * The attention scale C**-0.5 is folded into the K columns
      ((k*s) @ q^T == (k @ q^T) * s), so it is free in-kernel.
    * Matmul weights are cast to bf16 (MXU-peak dtype); biases / LN params
      stay f32 and are added after the f32 accumulation.
    """
    wk, wq, wv = params["wk"], params["wq"], params["wv"]
    n_heads, C, hs = wk.shape
    scale = C ** (-0.5)

    def heads_to_cols(w):                       # (H, C, hs) -> (C, H*hs)
        return jnp.transpose(w, (1, 0, 2)).reshape(C, n_heads * hs)

    wqkv = jnp.concatenate(
        [heads_to_cols(wk) * scale, heads_to_cols(wq), heads_to_cols(wv)],
        axis=1).astype(jnp.bfloat16)

    return {
        "n_heads": n_heads,
        "ln1_g": params["ln1_g"], "ln1_b": params["ln1_b"],
        "ln2_g": params["ln2_g"], "ln2_b": params["ln2_b"],
        "wqkv": wqkv,
        "wproj": params["wproj"].astype(jnp.bfloat16),
        "bproj": params["bproj"],
        "w1": params["w1"].astype(jnp.bfloat16),
        "b1": params["b1"],
        "w2": params["w2"].astype(jnp.bfloat16),
        "b2": params["b2"],
    }


if __name__ == "__main__":
    # Small shapes consistent with the module: B=2, T=8 (<= block_size),
    # n_embed=32, n_heads=4 -> head_size=8.
    B, T, C, H = 2, 8, 32, 4

    key = jax.random.PRNGKey(0)
    kx, kp = jax.random.split(key)
    x = jax.random.normal(kx, (B, T, C), jnp.float32)
    params = init_params(kp, n_embed=C, n_heads=H)
    packed = pack_params(params)

    out = transformer_block(x, packed)
    out = jax.block_until_ready(out)

    assert out.shape == (B, T, C) and out.dtype == jnp.float32
    assert bool(jnp.all(jnp.isfinite(out)))
    print("KERNEL_OK")
</pallas_src>

<mosaic_0001>
module attributes {stable_mosaic.version = 11 : i64} {
  func.func @_block_kernel(%arg0: i32, %arg1: memref<1x8x32xf32, #tpu.memory_space<vmem>>, %arg2: memref<1x32xf32, #tpu.memory_space<vmem>>, %arg3: memref<1x32xf32, #tpu.memory_space<vmem>>, %arg4: memref<32x96xbf16, #tpu.memory_space<vmem>>, %arg5: memref<32x32xbf16, #tpu.memory_space<vmem>>, %arg6: memref<1x32xf32, #tpu.memory_space<vmem>>, %arg7: memref<1x32xf32, #tpu.memory_space<vmem>>, %arg8: memref<1x32xf32, #tpu.memory_space<vmem>>, %arg9: memref<32x128xbf16, #tpu.memory_space<vmem>>, %arg10: memref<1x128xf32, #tpu.memory_space<vmem>>, %arg11: memref<128x32xbf16, #tpu.memory_space<vmem>>, %arg12: memref<1x32xf32, #tpu.memory_space<vmem>>, %arg13: memref<1x8x32xf32, #tpu.memory_space<vmem>>) attributes {dimension_semantics = [#tpu.dimension_semantics<parallel>], iteration_bounds = array<i64: 2>, scalar_prefetch = 0 : i64, scratch_operands = 0 : i64, tpu.core_type = #tpu.core_type<tc>, window_params = [{transform_indices = @transform_0, window_bounds = array<i64: 1, 8, 32>}, {pipeline_mode = #tpu.pipeline_mode<synchronous>, transform_indices = @transform_1, window_bounds = array<i64: 1, 32>}, {pipeline_mode = #tpu.pipeline_mode<synchronous>, transform_indices = @transform_2, window_bounds = array<i64: 1, 32>}, {pipeline_mode = #tpu.pipeline_mode<synchronous>, transform_indices = @transform_3, window_bounds = array<i64: 32, 96>}, {pipeline_mode = #tpu.pipeline_mode<synchronous>, transform_indices = @transform_4, window_bounds = array<i64: 32, 32>}, {pipeline_mode = #tpu.pipeline_mode<synchronous>, transform_indices = @transform_5, window_bounds = array<i64: 1, 32>}, {pipeline_mode = #tpu.pipeline_mode<synchronous>, transform_indices = @transform_6, window_bounds = array<i64: 1, 32>}, {pipeline_mode = #tpu.pipeline_mode<synchronous>, transform_indices = @transform_7, window_bounds = array<i64: 1, 32>}, {pipeline_mode = #tpu.pipeline_mode<synchronous>, transform_indices = @transform_8, window_bounds = array<i64: 32, 128>}, {pipeline_mode = #tpu.pipeline_mode<synchronous>, transform_indices = @transform_9, window_bounds = array<i64: 1, 128>}, {pipeline_mode = #tpu.pipeline_mode<synchronous>, transform_indices = @transform_10, window_bounds = array<i64: 128, 32>}, {pipeline_mode = #tpu.pipeline_mode<synchronous>, transform_indices = @transform_11, window_bounds = array<i64: 1, 32>}, {transform_indices = @transform_12, window_bounds = array<i64: 1, 8, 32>}]} {
    %c0 = arith.constant 0 : index
    %c0_0 = arith.constant 0 : index
    %c0_1 = arith.constant 0 : index
    %0 = vector.load %arg1[%c0, %c0_0, %c0_1] : memref<1x8x32xf32, #tpu.memory_space<vmem>>, vector<1x8x32xf32>
    %1 = vector.shape_cast %0 : vector<1x8x32xf32> to vector<8x32xf32>
    %cst = arith.constant dense<0.000000e+00> : vector<8xf32>
    %2 = vector.multi_reduction <add>, %1, %cst [1] : vector<8x32xf32> to vector<8xf32>
    %3 = vector.shape_cast %2 : vector<8xf32> to vector<8x1xf32>
    %cst_2 = arith.constant 3.200000e+01 : f32
    %4 = vector.broadcast %cst_2 : f32 to vector<8x1xf32>
    %5 = arith.divf %3, %4 : vector<8x1xf32>
    %6 = vector.broadcast %5 : vector<8x1xf32> to vector<8x32xf32>
    %7 = arith.subf %1, %6 : vector<8x32xf32>
    %8 = arith.mulf %7, %7 : vector<8x32xf32>
    %cst_3 = arith.constant dense<0.000000e+00> : vector<8xf32>
    %9 = vector.multi_reduction <add>, %8, %cst_3 [1] : vector<8x32xf32> to vector<8xf32>
    %10 = vector.shape_cast %9 : vector<8xf32> to vector<8x1xf32>
    %cst_4 = arith.constant 3.200000e+01 : f32
    %11 = vector.broadcast %cst_4 : f32 to vector<8x1xf32>
    %12 = arith.divf %10, %11 : vector<8x1xf32>
    %cst_5 = arith.constant 9.99999974E-6 : f32
    %13 = vector.broadcast %cst_5 : f32 to vector<8x1xf32>
    %14 = arith.addf %12, %13 : vector<8x1xf32>
    %15 = math.rsqrt %14 : vector<8x1xf32>
    %16 = vector.broadcast %15 : vector<8x1xf32> to vector<8x32xf32>
    %17 = arith.mulf %7, %16 : vector<8x32xf32>
    %c0_6 = arith.constant 0 : index
    %c0_7 = arith.constant 0 : index
    %18 = vector.load %arg2[%c0_6, %c0_7] : memref<1x32xf32, #tpu.memory_space<vmem>>, vector<1x32xf32>
    %19 = vector.broadcast %18 : vector<1x32xf32> to vector<8x32xf32>
    %20 = arith.mulf %17, %19 : vector<8x32xf32>
    %c0_8 = arith.constant 0 : index
    %c0_9 = arith.constant 0 : index
    %21 = vector.load %arg3[%c0_8, %c0_9] : memref<1x32xf32, #tpu.memory_space<vmem>>, vector<1x32xf32>
    %22 = vector.broadcast %21 : vector<1x32xf32> to vector<8x32xf32>
    %23 = arith.addf %20, %22 : vector<8x32xf32>
    %24 = arith.truncf %23 : vector<8x32xf32> to vector<8x32xbf16>
    %c0_10 = arith.constant 0 : index
    %c0_11 = arith.constant 0 : index
    %25 = vector.load %arg4[%c0_10, %c0_11] : memref<32x96xbf16, #tpu.memory_space<vmem>>, vector<32x96xbf16>
    %cst_12 = arith.constant dense<0.000000e+00> : vector<8x96xf32>
    %26 = tpu.matmul %24, %25, %cst_12 {dimension_numbers = #tpu.dot_dimension_numbers<[1], [0], [0], [1], [0, 0, 1, 1], [], []>} : vector<8x32xbf16>, vector<32x96xbf16>, vector<8x96xf32> -> vector<8x96xf32>
    %27 = tpu.iota {dimensions = array<i32: 0>} : vector<8x8xi32>
    %28 = tpu.iota {dimensions = array<i32: 1>} : vector<8x8xi32>
    %29 = arith.cmpi sle, %28, %27 : vector<8x8xi32>
    %30 = vector.extract_strided_slice %26 {offsets = [0, 0], sizes = [8, 8], strides = [1, 1]} : vector<8x96xf32> to vector<8x8xf32>
    %31 = arith.truncf %30 : vector<8x8xf32> to vector<8x8xbf16>
    %32 = vector.extract_strided_slice %26 {offsets = [0, 32], sizes = [8, 8], strides = [1, 1]} : vector<8x96xf32> to vector<8x8xf32>
    %33 = arith.truncf %32 : vector<8x8xf32> to vector<8x8xbf16>
    %34 = vector.extract_strided_slice %26 {offsets = [0, 64], sizes = [8, 8], strides = [1, 1]} : vector<8x96xf32> to vector<8x8xf32>
    %35 = arith.truncf %34 : vector<8x8xf32> to vector<8x8xbf16>
    %cst_13 = arith.constant dense<0.000000e+00> : vector<8x8xf32>
    %36 = tpu.matmul %31, %33, %cst_13 {dimension_numbers = #tpu.dot_dimension_numbers<[1], [1], [0], [0], [0, 0, 1, 0], [], []>} : vector<8x8xbf16>, vector<8x8xbf16>, vector<8x8xf32> -> vector<8x8xf32>
    %cst_14 = arith.constant 0xFF800000 : f32
    %37 = vector.broadcast %cst_14 : f32 to vector<8x8xf32>
    %38 = arith.select %29, %36, %37 : vector<8x8xi1>, vector<8x8xf32>
    %cst_15 = arith.constant dense<0xFF800000> : vector<8xf32>
    %39 = vector.multi_reduction <maximumf>, %38, %cst_15 [1] : vector<8x8xf32> to vector<8xf32>
    %40 = vector.shape_cast %39 : vector<8xf32> to vector<8x1xf32>
    %41 = vector.broadcast %40 : vector<8x1xf32> to vector<8x8xf32>
    %42 = arith.subf %38, %41 : vector<8x8xf32>
    %43 = math.exp %42 : vector<8x8xf32>
    %cst_16 = arith.constant dense<0.000000e+00> : vector<8xf32>
    %44 = vector.multi_reduction <add>, %43, %cst_16 [1] : vector<8x8xf32> to vector<8xf32>
    %45 = vector.shape_cast %44 : vector<8xf32> to vector<8x1xf32>
    %46 = arith.truncf %43 : vector<8x8xf32> to vector<8x8xbf16>
    %cst_17 = arith.constant dense<0.000000e+00> : vector<8x8xf32>
    %47 = tpu.matmul %46, %35, %cst_17 {dimension_numbers = #tpu.dot_dimension_numbers<[1], [0], [0], [1], [0, 0, 1, 1], [], []>} : vector<8x8xbf16>, vector<8x8xbf16>, vector<8x8xf32> -> vector<8x8xf32>
    %48 = tpu.reciprocal %45 {approx = true} : vector<8x1xf32> -> vector<8x1xf32>
    %49 = vector.broadcast %48 : vector<8x1xf32> to vector<8x8xf32>
    %50 = arith.mulf %47, %49 : vector<8x8xf32>
    %51 = arith.truncf %50 : vector<8x8xf32> to vector<8x8xbf16>
    %c0_18 = arith.constant 0 : index
    %c0_19 = arith.constant 0 : index
    %52 = vector.load %arg5[%c0_18, %c0_19] : memref<32x32xbf16, #tpu.memory_space<vmem>>, vector<8x32xbf16>
    %cst_20 = arith.constant dense<0.000000e+00> : vector<8x32xf32>
    %53 = tpu.matmul %51, %52, %cst_20 {dimension_numbers = #tpu.dot_dimension_numbers<[1], [0], [0], [1], [0, 0, 1, 1], [], []>} : vector<8x8xbf16>, vector<8x32xbf16>, vector<8x32xf32> -> vector<8x32xf32>
    %54 = vector.extract_strided_slice %26 {offsets = [0, 8], sizes = [8, 8], strides = [1, 1]} : vector<8x96xf32> to vector<8x8xf32>
    %55 = arith.truncf %54 : vector<8x8xf32> to vector<8x8xbf16>
    %56 = vector.extract_strided_slice %26 {offsets = [0, 40], sizes = [8, 8], strides = [1, 1]} : vector<8x96xf32> to vector<8x8xf32>
    %57 = arith.truncf %56 : vector<8x8xf32> to vector<8x8xbf16>
    %58 = vector.extract_strided_slice %26 {offsets = [0, 72], sizes = [8, 8], strides = [1, 1]} : vector<8x96xf32> to vector<8x8xf32>
    %59 = arith.truncf %58 : vector<8x8xf32> to vector<8x8xbf16>
    %cst_21 = arith.constant dense<0.000000e+00> : vector<8x8xf32>
    %60 = tpu.matmul %55, %57, %cst_21 {dimension_numbers = #tpu.dot_dimension_numbers<[1], [1], [0], [0], [0, 0, 1, 0], [], []>} : vector<8x8xbf16>, vector<8x8xbf16>, vector<8x8xf32> -> vector<8x8xf32>
    %cst_22 = arith.constant 0xFF800000 : f32
    %61 = vector.broadcast %cst_22 : f32 to vector<8x8xf32>
    %62 = arith.select %29, %60, %61 : vector<8x8xi1>, vector<8x8xf32>
    %cst_23 = arith.constant dense<0xFF800000> : vector<8xf32>
    %63 = vector.multi_reduction <maximumf>, %62, %cst_23 [1] : vector<8x8xf32> to vector<8xf32>
    %64 = vector.shape_cast %63 : vector<8xf32> to vector<8x1xf32>
    %65 = vector.broadcast %64 : vector<8x1xf32> to vector<8x8xf32>
    %66 = arith.subf %62, %65 : vector<8x8xf32>
    %67 = math.exp %66 : vector<8x8xf32>
    %cst_24 = arith.constant dense<0.000000e+00> : vector<8xf32>
    %68 = vector.multi_reduction <add>, %67, %cst_24 [1] : vector<8x8xf32> to vector<8xf32>
    %69 = vector.shape_cast %68 : vector<8xf32> to vector<8x1xf32>
    %70 = arith.truncf %67 : vector<8x8xf32> to vector<8x8xbf16>
    %cst_25 = arith.constant dense<0.000000e+00> : vector<8x8xf32>
    %71 = tpu.matmul %70, %59, %cst_25 {dimension_numbers = #tpu.dot_dimension_numbers<[1], [0], [0], [1], [0, 0, 1, 1], [], []>} : vector<8x8xbf16>, vector<8x8xbf16>, vector<8x8xf32> -> vector<8x8xf32>
    %72 = tpu.reciprocal %69 {approx = true} : vector<8x1xf32> -> vector<8x1xf32>
    %73 = vector.broadcast %72 : vector<8x1xf32> to vector<8x8xf32>
    %74 = arith.mulf %71, %73 : vector<8x8xf32>
    %75 = arith.truncf %74 : vector<8x8xf32> to vector<8x8xbf16>
    %c8 = arith.constant 8 : index
    %c0_26 = arith.constant 0 : index
    %76 = vector.load %arg5[%c8, %c0_26] : memref<32x32xbf16, #tpu.memory_space<vmem>>, vector<8x32xbf16>
    %cst_27 = arith.constant dense<0.000000e+00> : vector<8x32xf32>
    %77 = tpu.matmul %75, %76, %cst_27 {dimension_numbers = #tpu.dot_dimension_numbers<[1], [0], [0], [1], [0, 0, 1, 1], [], []>} : vector<8x8xbf16>, vector<8x32xbf16>, vector<8x32xf32> -> vector<8x32xf32>
    %78 = arith.addf %53, %77 : vector<8x32xf32>
    %79 = vector.extract_strided_slice %26 {offsets = [0, 16], sizes = [8, 8], strides = [1, 1]} : vector<8x96xf32> to vector<8x8xf32>
    %80 = arith.truncf %79 : vector<8x8xf32> to vector<8x8xbf16>
    %81 = vector.extract_strided_slice %26 {offsets = [0, 48], sizes = [8, 8], strides = [1, 1]} : vector<8x96xf32> to vector<8x8xf32>
    %82 = arith.truncf %81 : vector<8x8xf32> to vector<8x8xbf16>
    %83 = vector.extract_strided_slice %26 {offsets = [0, 80], sizes = [8, 8], strides = [1, 1]} : vector<8x96xf32> to vector<8x8xf32>
    %84 = arith.truncf %83 : vector<8x8xf32> to vector<8x8xbf16>
    %cst_28 = arith.constant dense<0.000000e+00> : vector<8x8xf32>
    %85 = tpu.matmul %80, %82, %cst_28 {dimension_numbers = #tpu.dot_dimension_numbers<[1], [1], [0], [0], [0, 0, 1, 0], [], []>} : vector<8x8xbf16>, vector<8x8xbf16>, vector<8x8xf32> -> vector<8x8xf32>
    %cst_29 = arith.constant 0xFF800000 : f32
    %86 = vector.broadcast %cst_29 : f32 to vector<8x8xf32>
    %87 = arith.select %29, %85, %86 : vector<8x8xi1>, vector<8x8xf32>
    %cst_30 = arith.constant dense<0xFF800000> : vector<8xf32>
    %88 = vector.multi_reduction <maximumf>, %87, %cst_30 [1] : vector<8x8xf32> to vector<8xf32>
    %89 = vector.shape_cast %88 : vector<8xf32> to vector<8x1xf32>
    %90 = vector.broadcast %89 : vector<8x1xf32> to vector<8x8xf32>
    %91 = arith.subf %87, %90 : vector<8x8xf32>
    %92 = math.exp %91 : vector<8x8xf32>
    %cst_31 = arith.constant dense<0.000000e+00> : vector<8xf32>
    %93 = vector.multi_reduction <add>, %92, %cst_31 [1] : vector<8x8xf32> to vector<8xf32>
    %94 = vector.shape_cast %93 : vector<8xf32> to vector<8x1xf32>
    %95 = arith.truncf %92 : vector<8x8xf32> to vector<8x8xbf16>
    %cst_32 = arith.constant dense<0.000000e+00> : vector<8x8xf32>
    %96 = tpu.matmul %95, %84, %cst_32 {dimension_numbers = #tpu.dot_dimension_numbers<[1], [0], [0], [1], [0, 0, 1, 1], [], []>} : vector<8x8xbf16>, vector<8x8xbf16>, vector<8x8xf32> -> vector<8x8xf32>
    %97 = tpu.reciprocal %94 {approx = true} : vector<8x1xf32> -> vector<8x1xf32>
    %98 = vector.broadcast %97 : vector<8x1xf32> to vector<8x8xf32>
    %99 = arith.mulf %96, %98 : vector<8x8xf32>
    %100 = arith.truncf %99 : vector<8x8xf32> to vector<8x8xbf16>
    %c16 = arith.constant 16 : index
    %c0_33 = arith.constant 0 : index
    %101 = vector.load %arg5[%c16, %c0_33] : memref<32x32xbf16, #tpu.memory_space<vmem>>, vector<8x32xbf16>
    %cst_34 = arith.constant dense<0.000000e+00> : vector<8x32xf32>
    %102 = tpu.matmul %100, %101, %cst_34 {dimension_numbers = #tpu.dot_dimension_numbers<[1], [0], [0], [1], [0, 0, 1, 1], [], []>} : vector<8x8xbf16>, vector<8x32xbf16>, vector<8x32xf32> -> vector<8x32xf32>
    %103 = arith.addf %78, %102 : vector<8x32xf32>
    %104 = vector.extract_strided_slice %26 {offsets = [0, 24], sizes = [8, 8], strides = [1, 1]} : vector<8x96xf32> to vector<8x8xf32>
    %105 = arith.truncf %104 : vector<8x8xf32> to vector<8x8xbf16>
    %106 = vector.extract_strided_slice %26 {offsets = [0, 56], sizes = [8, 8], strides = [1, 1]} : vector<8x96xf32> to vector<8x8xf32>
    %107 = arith.truncf %106 : vector<8x8xf32> to vector<8x8xbf16>
    %108 = vector.extract_strided_slice %26 {offsets = [0, 88], sizes = [8, 8], strides = [1, 1]} : vector<8x96xf32> to vector<8x8xf32>
    %109 = arith.truncf %108 : vector<8x8xf32> to vector<8x8xbf16>
    %cst_35 = arith.constant dense<0.000000e+00> : vector<8x8xf32>
    %110 = tpu.matmul %105, %107, %cst_35 {dimension_numbers = #tpu.dot_dimension_numbers<[1], [1], [0], [0], [0, 0, 1, 0], [], []>} : vector<8x8xbf16>, vector<8x8xbf16>, vector<8x8xf32> -> vector<8x8xf32>
    %cst_36 = arith.constant 0xFF800000 : f32
    %111 = vector.broadcast %cst_36 : f32 to vector<8x8xf32>
    %112 = arith.select %29, %110, %111 : vector<8x8xi1>, vector<8x8xf32>
    %cst_37 = arith.constant dense<0xFF800000> : vector<8xf32>
    %113 = vector.multi_reduction <maximumf>, %112, %cst_37 [1] : vector<8x8xf32> to vector<8xf32>
    %114 = vector.shape_cast %113 : vector<8xf32> to vector<8x1xf32>
    %115 = vector.broadcast %114 : vector<8x1xf32> to vector<8x8xf32>
    %116 = arith.subf %112, %115 : vector<8x8xf32>
    %117 = math.exp %116 : vector<8x8xf32>
    %cst_38 = arith.constant dense<0.000000e+00> : vector<8xf32>
    %118 = vector.multi_reduction <add>, %117, %cst_38 [1] : vector<8x8xf32> to vector<8xf32>
    %119 = vector.shape_cast %118 : vector<8xf32> to vector<8x1xf32>
    %120 = arith.truncf %117 : vector<8x8xf32> to vector<8x8xbf16>
    %cst_39 = arith.constant dense<0.000000e+00> : vector<8x8xf32>
    %121 = tpu.matmul %120, %109, %cst_39 {dimension_numbers = #tpu.dot_dimension_numbers<[1], [0], [0], [1], [0, 0, 1, 1], [], []>} : vector<8x8xbf16>, vector<8x8xbf16>, vector<8x8xf32> -> vector<8x8xf32>
    %122 = tpu.reciprocal %119 {approx = true} : vector<8x1xf32> -> vector<8x1xf32>
    %123 = vector.broadcast %122 : vector<8x1xf32> to vector<8x8xf32>
    %124 = arith.mulf %121, %123 : vector<8x8xf32>
    %125 = arith.truncf %124 : vector<8x8xf32> to vector<8x8xbf16>
    %c24 = arith.constant 24 : index
    %c0_40 = arith.constant 0 : index
    %126 = vector.load %arg5[%c24, %c0_40] : memref<32x32xbf16, #tpu.memory_space<vmem>>, vector<8x32xbf16>
    %cst_41 = arith.constant dense<0.000000e+00> : vector<8x32xf32>
    %127 = tpu.matmul %125, %126, %cst_41 {dimension_numbers = #tpu.dot_dimension_numbers<[1], [0], [0], [1], [0, 0, 1, 1], [], []>} : vector<8x8xbf16>, vector<8x32xbf16>, vector<8x32xf32> -> vector<8x32xf32>
    %128 = arith.addf %103, %127 : vector<8x32xf32>
    %129 = arith.addf %1, %128 : vector<8x32xf32>
    %c0_42 = arith.constant 0 : index
    %c0_43 = arith.constant 0 : index
    %130 = vector.load %arg6[%c0_42, %c0_43] : memref<1x32xf32, #tpu.memory_space<vmem>>, vector<1x32xf32>
    %131 = vector.broadcast %130 : vector<1x32xf32> to vector<8x32xf32>
    %132 = arith.addf %129, %131 : vector<8x32xf32>
    %cst_44 = arith.constant dense<0.000000e+00> : vector<8xf32>
    %133 = vector.multi_reduction <add>, %132, %cst_44 [1] : vector<8x32xf32> to vector<8xf32>
    %134 = vector.shape_cast %133 : vector<8xf32> to vector<8x1xf32>
    %cst_45 = arith.constant 3.200000e+01 : f32
    %135 = vector.broadcast %cst_45 : f32 to vector<8x1xf32>
    %136 = arith.divf %134, %135 : vector<8x1xf32>
    %137 = vector.broadcast %136 : vector<8x1xf32> to vector<8x32xf32>
    %138 = arith.subf %132, %137 : vector<8x32xf32>
    %139 = arith.mulf %138, %138 : vector<8x32xf32>
    %cst_46 = arith.constant dense<0.000000e+00> : vector<8xf32>
    %140 = vector.multi_reduction <add>, %139, %cst_46 [1] : vector<8x32xf32> to vector<8xf32>
    %141 = vector.shape_cast %140 : vector<8xf32> to vector<8x1xf32>
    %cst_47 = arith.constant 3.200000e+01 : f32
    %142 = vector.broadcast %cst_47 : f32 to vector<8x1xf32>
    %143 = arith.divf %141, %142 : vector<8x1xf32>
    %cst_48 = arith.constant 9.99999974E-6 : f32
    %144 = vector.broadcast %cst_48 : f32 to vector<8x1xf32>
    %145 = arith.addf %143, %144 : vector<8x1xf32>
    %146 = math.rsqrt %145 : vector<8x1xf32>
    %147 = vector.broadcast %146 : vector<8x1xf32> to vector<8x32xf32>
    %148 = arith.mulf %138, %147 : vector<8x32xf32>
    %c0_49 = arith.constant 0 : index
    %c0_50 = arith.constant 0 : index
    %149 = vector.load %arg7[%c0_49, %c0_50] : memref<1x32xf32, #tpu.memory_space<vmem>>, vector<1x32xf32>
    %150 = vector.broadcast %149 : vector<1x32xf32> to vector<8x32xf32>
    %151 = arith.mulf %148, %150 : vector<8x32xf32>
    %c0_51 = arith.constant 0 : index
    %c0_52 = arith.constant 0 : index
    %152 = vector.load %arg8[%c0_51, %c0_52] : memref<1x32xf32, #tpu.memory_space<vmem>>, vector<1x32xf32>
    %153 = vector.broadcast %152 : vector<1x32xf32> to vector<8x32xf32>
    %154 = arith.addf %151, %153 : vector<8x32xf32>
    %155 = arith.truncf %154 : vector<8x32xf32> to vector<8x32xbf16>
    %c0_53 = arith.constant 0 : index
    %c0_54 = arith.constant 0 : index
    %156 = vector.load %arg9[%c0_53, %c0_54] : memref<32x128xbf16, #tpu.memory_space<vmem>>, vector<32x128xbf16>
    %cst_55 = arith.constant dense<0.000000e+00> : vector<8x128xf32>
    %157 = tpu.matmul %155, %156, %cst_55 {dimension_numbers = #tpu.dot_dimension_numbers<[1], [0], [0], [1], [0, 0, 1, 1], [], []>} : vector<8x32xbf16>, vector<32x128xbf16>, vector<8x128xf32> -> vector<8x128xf32>
    %c0_56 = arith.constant 0 : index
    %c0_57 = arith.constant 0 : index
    %158 = vector.load %arg10[%c0_56, %c0_57] : memref<1x128xf32, #tpu.memory_space<vmem>>, vector<1x128xf32>
    %159 = vector.broadcast %158 : vector<1x128xf32> to vector<8x128xf32>
    %160 = arith.addf %157, %159 : vector<8x128xf32>
    %cst_58 = arith.constant 0.000000e+00 : f32
    %161 = vector.broadcast %cst_58 : f32 to vector<8x128xf32>
    %162 = arith.maximumf %160, %161 : vector<8x128xf32>
    %163 = arith.truncf %162 : vector<8x128xf32> to vector<8x128xbf16>
    %c0_59 = arith.constant 0 : index
    %c0_60 = arith.constant 0 : index
    %164 = vector.load %arg11[%c0_59, %c0_60] : memref<128x32xbf16, #tpu.memory_space<vmem>>, vector<128x32xbf16>
    %cst_61 = arith.constant dense<0.000000e+00> : vector<8x32xf32>
    %165 = tpu.matmul %163, %164, %cst_61 {dimension_numbers = #tpu.dot_dimension_numbers<[1], [0], [0], [1], [0, 0, 1, 1], [], []>} : vector<8x128xbf16>, vector<128x32xbf16>, vector<8x32xf32> -> vector<8x32xf32>
    %c0_62 = arith.constant 0 : index
    %c0_63 = arith.constant 0 : index
    %166 = vector.load %arg12[%c0_62, %c0_63] : memref<1x32xf32, #tpu.memory_space<vmem>>, vector<1x32xf32>
    %167 = vector.broadcast %166 : vector<1x32xf32> to vector<8x32xf32>
    %168 = arith.addf %165, %167 : vector<8x32xf32>
    %169 = arith.addf %132, %168 : vector<8x32xf32>
    %170 = vector.shape_cast %169 : vector<8x32xf32> to vector<1x8x32xf32>
    %c0_64 = arith.constant 0 : index
    %c0_65 = arith.constant 0 : index
    %c0_66 = arith.constant 0 : index
    %171 = vector.load %arg13[%c0_64, %c0_65, %c0_66] : memref<1x8x32xf32, #tpu.memory_space<vmem>>, vector<1x8x32xf32>
    tpu.vector_store %arg13[%c0_64, %c0_65, %c0_66], %170 {strides = array<i32>} : memref<1x8x32xf32, #tpu.memory_space<vmem>>, vector<1x8x32xf32>,
    return
  }
  func.func @transform_0(%arg0: i32) -> (i32, i32, i32) {
    %c0_i32 = arith.constant 0 : i32
    %c0_i32_0 = arith.constant 0 : i32
    %c0_i32_1 = arith.constant 0 : i32
    return %arg0, %c0_i32, %c0_i32_0 : i32, i32, i32
  }
  func.func @transform_1(%arg0: i32) -> (i32, i32) {
    %c0_i32 = arith.constant 0 : i32
    %c0_i32_0 = arith.constant 0 : i32
    %c0_i32_1 = arith.constant 0 : i32
    return %c0_i32, %c0_i32_0 : i32, i32
  }
  func.func @transform_2(%arg0: i32) -> (i32, i32) {
    %c0_i32 = arith.constant 0 : i32
    %c0_i32_0 = arith.constant 0 : i32
    %c0_i32_1 = arith.constant 0 : i32
    return %c0_i32, %c0_i32_0 : i32, i32
  }
  func.func @transform_3(%arg0: i32) -> (i32, i32) {
    %c0_i32 = arith.constant 0 : i32
    %c0_i32_0 = arith.constant 0 : i32
    %c0_i32_1 = arith.constant 0 : i32
    return %c0_i32, %c0_i32_0 : i32, i32
  }
  func.func @transform_4(%arg0: i32) -> (i32, i32) {
    %c0_i32 = arith.constant 0 : i32
    %c0_i32_0 = arith.constant 0 : i32
    %c0_i32_1 = arith.constant 0 : i32
    return %c0_i32, %c0_i32_0 : i32, i32
  }
  func.func @transform_5(%arg0: i32) -> (i32, i32) {
    %c0_i32 = arith.constant 0 : i32
    %c0_i32_0 = arith.constant 0 : i32
    %c0_i32_1 = arith.constant 0 : i32
    return %c0_i32, %c0_i32_0 : i32, i32
  }
  func.func @transform_6(%arg0: i32) -> (i32, i32) {
    %c0_i32 = arith.constant 0 : i32
    %c0_i32_0 = arith.constant 0 : i32
    %c0_i32_1 = arith.constant 0 : i32
    return %c0_i32, %c0_i32_0 : i32, i32
  }
  func.func @transform_7(%arg0: i32) -> (i32, i32) {
    %c0_i32 = arith.constant 0 : i32
    %c0_i32_0 = arith.constant 0 : i32
    %c0_i32_1 = arith.constant 0 : i32
    return %c0_i32, %c0_i32_0 : i32, i32
  }
  func.func @transform_8(%arg0: i32) -> (i32, i32) {
    %c0_i32 = arith.constant 0 : i32
    %c0_i32_0 = arith.constant 0 : i32
    %c0_i32_1 = arith.constant 0 : i32
    return %c0_i32, %c0_i32_0 : i32, i32
  }
  func.func @transform_9(%arg0: i32) -> (i32, i32) {
    %c0_i32 = arith.constant 0 : i32
    %c0_i32_0 = arith.constant 0 : i32
    %c0_i32_1 = arith.constant 0 : i32
    return %c0_i32, %c0_i32_0 : i32, i32
  }
  func.func @transform_10(%arg0: i32) -> (i32, i32) {
    %c0_i32 = arith.constant 0 : i32
    %c0_i32_0 = arith.constant 0 : i32
    %c0_i32_1 = arith.constant 0 : i32
    return %c0_i32, %c0_i32_0 : i32, i32
  }
  func.func @transform_11(%arg0: i32) -> (i32, i32) {
    %c0_i32 = arith.constant 0 : i32
    %c0_i32_0 = arith.constant 0 : i32
    %c0_i32_1 = arith.constant 0 : i32
    return %c0_i32, %c0_i32_0 : i32, i32
  }
  func.func @transform_12(%arg0: i32) -> (i32, i32, i32) {
    %c0_i32 = arith.constant 0 : i32
    %c0_i32_0 = arith.constant 0 : i32
    %c0_i32_1 = arith.constant 0 : i32
    return %arg0, %c0_i32, %c0_i32_0 : i32, i32, i32
  }
}

</mosaic_0001>

<bundles_post_ra>
// kernel: tpu_custom_call.1
= control target key start
LH: loop header
LB: loop body
LE: loop exit
PB: predicated region body
PF: predicated region fallthrough
CT: control target
= control target key end

     0   :  { %s1586_s0 = inlined_call_operand.vmem [shape: f32[2,8,32], index: 0, kind: input, shape index: {}]   ;;  %s1587_s1 = inlined_call_operand.vmem [shape: f32[1,32], index: 1, kind: input, shape index: {}]   ;;  %s1588_s2 = inlined_call_operand.vmem [shape: f32[1,32], index: 2, kind: input, shape index: {}]   ;;  %s1589_s3 = inlined_call_operand.vmem [shape: bf16[32,96], index: 3, kind: input, shape index: {}]   ;;  %s1590_s4 = inlined_call_operand.vmem [shape: bf16[32,32], index: 4, kind: input, shape index: {}]   ;;  %s1591_s5 = inlined_call_operand.vmem [shape: f32[1,32], index: 5, kind: input, shape index: {}]   ;;  %s1592_s6 = inlined_call_operand.vmem [shape: f32[1,32], index: 6, kind: input, shape index: {}]   ;;  %s1593_s7 = inlined_call_operand.vmem [shape: f32[1,32], index: 7, kind: input, shape index: {}]   ;;  %s1594_s8 = inlined_call_operand.vmem [shape: bf16[32,128], index: 8, kind: input, shape index: {}]   ;;  %s1595_s9 = inlined_call_operand.vmem [shape: f32[1,128], index: 9, kind: input, shape index: {}]   ;;  %s1596_s10 = inlined_call_operand.vmem [shape: bf16[128,32], index: 10, kind: input, shape index: {}]   ;;  %s1597_s11 = inlined_call_operand.vmem [shape: f32[1,32], index: 11, kind: input, shape index: {}]   ;;  %s1598_s12 = inlined_call_operand.hbm [shape: f32[2,8,32], index: 12, kind: output, shape index: {}]  }
   0x1   :  { %1599 = sst [smem:[#allocation5_spill]] %s1586_s0 }
   0x2   :  { %1600 = sst [smem:[#allocation6_spill]] %s1587_s1 }
   0x3   :  { %1601 = sst [smem:[#allocation7_spill]] %s1588_s2 }
   0x4   :  { %17 = vsyncpa [#allocation3], 0 }
   0x5   :  { %19 = vsyncpa [#allocation3 + $0x1], 0  ;;  %s1345_s21 = smov 0   ;;  %s1347_s22 = smov 0  }
   0x6   :  { %s1349_s23 = smov 0   ;;  %s1351_s24 = smov 0  }
   0x7 LB: > { %s1366_s25 = sadd.s32 4294967295, %s1266_s24   ;;  %s1040_s26 = sadd.s32 4294967294, %s1266_s24   ;;  %s1266_s24 = sphi %s1351_s24, %s1610_s24   ;;  %s1262_s23 = sphi %s1349_s23, %s1609_s23   ;;  %s1258_s22 = sphi %s1347_s22, %s1608_s22   ;;  %s1254_s21 = sphi %s1345_s21, %s1607_s21  }
   0x8   : > { %s1370_s27 = sadd.s32 1, %s1266_s24   ;;  %s289_s28 = sadd.s32 1, %s1262_s23 }
   0x9   : > { %s286_s29 = ssub.s32 %s1266_s24, %s1370_s27  ;;  %p299_p0 = scmp.ne.s32.totalorder %s1262_s23, %s1258_s22 }
   0xa   : > { %p287_p1 = scmp.eq.s32.totalorder %s286_s29, 0  ;;  %p300_p2 = scmp.eq.s32.totalorder %s1366_s25, 1 }
   0xb   : > { %p305_p3 = scmp.ne.s32.totalorder %s1258_s22, %s1254_s21  ;;  %p306_p4 = scmp.eq.s32.totalorder %s1040_s26, 1 }
   0xc   : > { %s1381_s30 = scalar_select %p287_p1, %s1262_s23, %s289_s28  }
   0xd   : > { %p1383_p5 = por %p300_p2, %p299_p0  ;;  %p1387_p6 = por %p306_p4, %p305_p3 }
   0xe   : > { %p1043_p7 = scmp.ge.s32.totalorder %s1266_s24, 1  ;;  %p364_p8 = scmp.lt.s32.totalorder %s1266_s24, 3 }
  0x10   : > { %p365_p9 = pnand %p1043_p7, %p364_p8 }
  0x11   : > { %p405_p10 = scmp.lt.s32.totalorder (!%p365_p9), %s1366_s25, 1  ;;  %s1604_s0 = sld [smem:[#allocation5_spill]] (!%p365_p9) }
  0x12   : > { %368 = sbr.rel (%p365_p9) target bundleno = 2043 (0x7fb), region = 68  ;;  %s1605_s1 = sld [smem:[#allocation6_spill]] (!%p365_p9) }
  0x13   : > { %s1606_s2 = sld [smem:[#allocation7_spill]] (!%p365_p9)  ;;  %s1270_s20 = smov (!%p365_p9), 64  }
  0x14   : > { %s1271_s26 = smov (!%p365_p9), 96   ;;  %s1272_s28 = smov (!%p365_p9), 120  }
  0x15   : > { %s1273_s29 = smov (!%p365_p9), 80   ;;  %s1276_s17 = smov (!%p365_p9), 40  }
  0x16   : > { %s1277_s18 = smov (!%p365_p9), 72  }
  0x17   : > { %s406_s15 = scalar_select %p405_p10, %s1366_s25, 1  ;;  %vm411_vm0 = vcmask 261120   ;;  %v1268_v2 = vmov 32.0   ;;  %v1113_v14 = vld [vmem:[%s1589_s3 + $0x8] sm:$0xff]  ;;  %v1112_v15 = vld [vmem:[%s1589_s3] sm:$0xff]  ;;  %vm529_vm5 = vcmask 1043456   ;;  %v484_v44 = vlaneseq }
  0x18   : > { %1182 = vrcp.f32 %v1268_v2  ;;  %477 = vmatpush.bf16.msra.mxu0 %v1113_v14  ;;  %v1175_v25 = vld [vmem:[%s1605_s1] ss:$0 sm:$0xff]  ;;  %vm493_vm6 = vcmask 64512  }
  0x19   : > { %s1045_s16 = sshll.u32 %s406_s15, 3  ;;  %v1176_v28 = vld [vmem:[%s1606_s2] ss:$0 sm:$0xff]  ;;  %s1274_s15 = smov 104   ;;  %v1436_v45 = vshrl.u32 %v484_v44, 7  ;;  %v1438_v46 = vand.u32 127, %v484_v44 }
  0x1a   : > { %s408_s19 = scalar_lea.vmem %s1604_s0, %s1045_s16  ;;  %s1275_s16 = smov 112  }
  0x1b   : > { %v1398_v0 = vld [vmem:[%s408_s19] sm:$0xff]  ;;  %s1269_s19 = smov 88   ;;  %vm488_vm7 = vcmp.le.s32.totalorder %v1438_v46, %v1436_v45 }
  0x1c   : > { %v412_v1 = vsel %vm411_vm0, %v1398_v0, 0.0  ;;  %478 = vmatpush.bf16.msra.mxu0 %v1112_v15 }
  0x1d   : > { %413 = vadd.xlane.f32.xlu0 %v412_v1 }
  0x1e   : > { %v1183_v3 = vpop.eup %1182 }
  0x1f   : > { %v416_v4 = vmul.f32 32.0, %v1183_v3  ;;  %vm420_vm1 = vweird.f32 %v1183_v3 }
  0x21   : > { %v417_v5 = vsub.f32 1.0, %v416_v4 }
  0x23   : > { %v418_v6 = vmul.f32 %v1183_v3, %v417_v5 }
  0x25   : > { %v419_v7 = vadd.f32 %v1183_v3, %v418_v6 }
  0x27   : > { %v1402_v8 = vsel %vm420_vm1, %v1183_v3, %v419_v7  ;;  %v549_v7 = vld [vmem:[%s1590_s4] sm:$0xf] }
  0x90   : > { %v414_v9 = vpop.xlane.xlu0 %413 }
  0x91   : > { %v422_v10 = vmul.f32 %v1402_v8, %v414_v9  ;;  %v632_v9 = vsel %vm529_vm5, %v549_v7, 0 }
  0x92   : > { %641 = vmatpush.bf16.msra.mxu1 %v632_v9 }
  0x93   : > { %v423_v11 = vsub.f32 %v1398_v0, %v422_v10 }
  0x95   : > { %v424_v12 = vmul.f32 %v423_v11, %v423_v11 }
  0x97   : > { %v425_v13 = vsel %vm411_vm0, %v424_v12, 0.0 }
  0x98   : > { %426 = vadd.xlane.f32.xlu0 %v425_v13 }
 0x10b   : > { %v427_v16 = vpop.xlane.xlu0 %426 }
 0x10c   : > { %v428_v17 = vmul.f32 %v427_v16, %v1402_v8 }
 0x10e   : > { %v429_v18 = vadd.f32 1e-05, %v428_v17 }
 0x110   : > { %1184 = vrsqrt.f32 %v429_v18  ;;  %vm436_vm3 = vweird.f32 %v429_v18 }
 0x116   : > { %v1185_v19 = vpop.eup %1184 }
 0x117   : > { %v431_v20 = vmul.f32 %v1185_v19, %v429_v18  ;;  %vm437_vm2 = vweird.f32 %v1185_v19 }
 0x118   : > { %vm438_vm4 = vmor %vm436_vm3, %vm437_vm2 }
 0x119   : > { %v432_v21 = vmul.f32 %v1185_v19, %v431_v20 }
 0x11b   : > { %v433_v22 = vmul.f32 0.5, %v432_v21 }
 0x11d   : > { %v434_v23 = vsub.f32 1.5, %v433_v22 }
 0x11f   : > { %v435_v24 = vmul.f32 %v1185_v19, %v434_v23 }
 0x121   : > { %v439_v26 = vsel %vm438_vm4, %v1185_v19, %v435_v24 }
 0x122   : > { %v440_v27 = vmul.f32 %v439_v26, %v423_v11 }
 0x124   : > { %v445_v29 = vmul.f32 %v1175_v25, %v440_v27  ;;  %v608_v25 = vld [vmem:[%s1590_s4 + $0x4] sm:$0xf] }
 0x125   : > { %v613_v26 = vsel %vm529_vm5, %v608_v25, 0  ;;  %v1114_v25 = vld [vmem:[%s1594_s8] sm:$0xff] }
 0x126   : > { %v450_v30 = vadd.f32 %v1176_v28, %v445_v29  ;;  %622 = vmatpush.bf16.msrb.mxu0 %v613_v26  ;;  %v1123_v26 = vld [vmem:[%s1596_s10 + $0x38] sm:$0xff] }
 0x128   : > { %v451_v31 = vpack.c.bf16 %v450_v30, %v450_v30 }
 0x12a   : > { %1054 = vmatmul.msk.bf16.vlgmr.msra.gmra.mxu0 %vm411_vm0, %v451_v31 }
 0x1a7   : > { %v480_v32 = vpop.f32.mrf.mxu0 }
 0x1a8   : > { %v1421_v33 = vpack.c.bf16 %v480_v32, %v480_v32 }
 0x1aa   : > { %552 = vrot.lane.b32.xlu0 %v1421_v33, %s1269_s19  ;;  %524 = vrot.lane.b32.xlu2 %v1421_v33, %s1270_s20  ;;  %s1278_s19 = smov 56  }
 0x1ab   : > { %491 = vrot.lane.b32.xlu1 %v1421_v33, %s1271_s26  ;;  %s402_s26 = sand.u32 1, %s1258_s22  }
 0x1af   : > { %v482_v34 = vpop.f32.mrf.mxu0 }
 0x1b2   : > { %550 = vrot.lane.b32.xlu0 %v1421_v33, %s1272_s28  ;;  %s1044_s28 = sshll.u32 %s402_s26, 3 }
 0x1ba   : > { %649 = vrot.lane.b32.xlu0 %v1421_v33, %s1273_s29  ;;  %s1109_s29 = sshll.u32 %s1366_s25, 3  ;;  %s966_s25 = scalar_lea.sflag [#allocation3], %s402_s26 }
 0x1bb   : > { %s976_s0 = scalar_lea.hbm %s1598_s12, %s1109_s29 }
 0x1bc   : > { %s980_s1 = sshll.u32 %s976_s0, 4  ;;  %s981_s1 = int_to_ptr.hbm [resolvable:$true] %s980_s1 }
 0x1bd   : > { %s1218_s2 = sshra.s32 %s981_s1, 4  ;;  %s1219_s2 = int_to_ptr.hbm [resolvable:$true] %s1218_s2 }
 0x1be   : > { %p1225_p0 = scmp.lt.s32.totalorder %s1219_s2, %s1598_s12 }
 0x1c2   : > { %726 = vrot.lane.b32.xlu0 %v1421_v33, %s1274_s15  ;;  %s1279_s15 = smov 48  }
 0x204   : > { %v525_v35 = vpop.permute.xlu2 %524 }
 0x205   : > { %v531_v36 = vsel %vm529_vm5, %v525_v35, 0 }
 0x206   : > { %540 = vmatpush.bf16.msra.mxu2 %v531_v36 }
 0x21c   : > { %v553_v37 = vpop.permute.xlu0 %552 }
 0x21d   : > { %v492_v38 = vpop.permute.xlu1 %491  ;;  %v558_v39 = vsel %vm493_vm6, %v553_v37, 0 }
 0x21e   : > { %v498_v40 = vsel %vm493_vm6, %v492_v38, 0 }
 0x21f   : > { %507 = vmatpush.bf16.xpose.msra.mxu3 %v498_v40 }
 0x224   : > { %v551_v41 = vpop.permute.xlu0 %550 }
 0x226   : > { %1055 = vmatmul.msk.bf16.vlgmr.msra.gmra.mxu3 %vm493_vm6, %v1421_v33 }
 0x227   : > { %567 = vmatpush.bf16.xpose.msrb.mxu3 %v558_v39 }
 0x22c   : > { %v650_v42 = vpop.permute.xlu0 %649 }
 0x22d   : > { %v655_v43 = vsel %vm493_vm6, %v650_v42, 0 }
 0x22f   : > { %664 = vmatpush.bf16.xpose.msra.mxu3 %v655_v43 }
 0x234   : > { %v727_v58 = vpop.permute.xlu0 %726 }
 0x236   : > { %1057 = vmatmul.msk.bf16.vlgmr.msrb.gmra.mxu3 %vm493_vm6, %v551_v41 }
 0x2a9   : > { %v509_v47 = vpop.f32.mrf.mxu3 }
 0x2aa   : > { %v513_v48 = vsel %vm488_vm7, %v509_v47, -inf }
 0x2ab   : > { %v514_v49 = vsel %vm493_vm6, %v513_v48, -inf }
 0x2ac   : > { %515 = vmax.xlane.f32.xlu1 %v514_v49 }
 0x2b1   : > { %v511_v50 = vpop.f32.mrf.mxu3 }
 0x2b9   : > { %v569_v51 = vpop.f32.mrf.mxu3 }
 0x2ba   : > { %v573_v52 = vsel %vm488_vm7, %v569_v51, -inf }
 0x2bb   : > { %v574_v53 = vsel %vm493_vm6, %v573_v52, -inf }
 0x2bc   : > { %575 = vmax.xlane.f32.xlu0 %v574_v53 }
 0x2c1   : > { %v571_v54 = vpop.f32.mrf.mxu3 }
 0x2c5   : > { %647 = vrot.lane.b32.xlu1 %v1421_v33, %s1275_s16 }
 0x2d0   : > { %760 = vrot.lane.b32.xlu0 %v1421_v33, %s1276_s17 }
 0x31f   : > { %v516_v55 = vpop.xlane.xlu1 %515 }
 0x320   : > { %v517_v56 = vsub.f32 %v513_v48, %v516_v55  ;;  %v784_v55 = vld [vmem:[%s1590_s4 + $0xc] sm:$0xf] }
 0x322   : > { %v518_v57 = vmul.f32 1.442695, %v517_v56  ;;  %v789_v56 = vsel %vm529_vm5, %v784_v55, 0  ;;  %v1181_v55 = vld [vmem:[%s1597_s11] ss:$0 sm:$0xff] }
 0x324   : > { %1186 = vpow2.f32 %v518_v57  ;;  %v705_v57 = vld [vmem:[%s1590_s4 + $0x8] sm:$0xf] }
 0x32a   : > { %v1187_v59 = vpop.eup %1186 }
 0x32b   : > { %v520_v60 = vsel %vm493_vm6, %v1187_v59, 0.0  ;;  %v523_v61 = vpack.c.bf16 %v1187_v59, %v1187_v59 }
 0x32c   : > { %521 = vadd.xlane.f32.xlu2 %v520_v60 }
 0x32d   : > { %1056 = vmatmul.msk.bf16.vlgmr.msra.gmra.mxu2 %vm493_vm6, %v523_v61 }
 0x32f   : > { %v576_v62 = vpop.xlane.xlu0 %575 }
 0x330   : > { %v577_v63 = vsub.f32 %v573_v52, %v576_v62 }
 0x332   : > { %v578_v1 = vmul.f32 1.442695, %v577_v63 }
 0x334   : > { %1188 = vpow2.f32 %v578_v1 }
 0x337   : > { %v648_v2 = vpop.permute.xlu1 %647 }
 0x338   : > { %1061 = vmatmul.msk.bf16.vlgmr.msra.gmra.mxu3 %vm493_vm6, %v648_v2 }
 0x33a   : > { %v1189_v3 = vpop.eup %1188 }
 0x33b   : > { %v580_v4 = vsel %vm493_vm6, %v1189_v3, 0.0  ;;  %v583_v18 = vpack.c.bf16 %v1189_v3, %v1189_v3 }
 0x33c   : > { %581 = vadd.xlane.f32.xlu0 %v580_v4 }
 0x342   : > { %v761_v5 = vpop.permute.xlu0 %760 }
 0x343   : > { %v766_v6 = vsel %vm529_vm5, %v761_v5, 0 }
 0x344   : > { %728 = vrot.lane.b32.xlu2 %v1421_v33, %s1277_s18  ;;  %775 = vmatpush.bf16.msrb.mxu3 %v766_v6 }
 0x34c   : > { %584 = vrot.lane.b32.xlu2 %v1421_v33, %s1278_s19  ;;  %s404_s19 = scalar_lea.vmem [#allocation2], %s1044_s28  ;;  %s1224_s28 = scalar_lea.hbm %s1598_s12, 16 }
 0x34d   : > { %s978_s20 = sshll.u32 %s404_s19, 4  ;;  %s979_s20 = int_to_ptr.vmem [resolvable:$true] %s978_s20 }
 0x39f   : > { %v522_v10 = vpop.xlane.xlu2 %521 }
 0x3a0   : > { %1190 = vrcp.f32 %v522_v10 }
 0x3a6   : > { %v1191_v14 = vpop.eup %1190 }
 0x3a7   : > { %v729_v11 = vpop.permute.xlu2 %728 }
 0x3a8   : > { %v734_v12 = vsel %vm493_vm6, %v729_v11, 0 }
 0x3a9   : > { %743 = vmatpush.bf16.xpose.msrb.mxu1 %v734_v12 }
 0x3af   : > { %v585_v13 = vpop.permute.xlu2 %584  ;;  %v582_v27 = vpop.xlane.xlu0 %581 }
 0x3b0   : > { %v542_v15 = vpop.f32.mrf.mxu2  ;;  %v590_v16 = vsel %vm529_vm5, %v585_v13, 0  ;;  %1192 = vrcp.f32 %v582_v27 }
 0x3b1   : > { %v547_v17 = vmul.f32 %v1191_v14, %v542_v15  ;;  %599 = vmatpush.bf16.msrb.mxu2 %v590_v16  ;;  %v1177_v15 = vld [vmem:[%s1591_s5] ss:$0 sm:$0xff] }
 0x3b3   : > { %v548_v19 = vpack.c.bf16 %v547_v17, %v547_v17 }
 0x3b4   : > { %1058 = vmatmul.msk.bf16.vlgmr.msrb.gmra.mxu2 %vm493_vm6, %v583_v18 }
 0x3b5   : > { %1060 = vmatmul.msk.bf16.vlgmr.msra.gmra.mxu1 %vm493_vm6, %v548_v19 }
 0x3b6   : > { %v1193_v29 = vpop.eup %1192  ;;  %950 = vmatpush.bf16.msra.mxu1 %v1123_v26 }
 0x3b8   : > { %v544_v20 = vpop.f32.mrf.mxu2 }
 0x3bb   : > { %v666_v21 = vpop.f32.mrf.mxu3 }
 0x3bc   : > { %v670_v22 = vsel %vm488_vm7, %v666_v21, -inf }
 0x3bd   : > { %v671_v23 = vsel %vm493_vm6, %v670_v22, -inf }
 0x3be   : > { %672 = vmax.xlane.f32.xlu2 %v671_v23 }
 0x3c3   : > { %v668_v24 = vpop.f32.mrf.mxu3 }
 0x3c5   : > { %1064 = vmatmul.msk.bf16.vlgmr.msrb.gmra.mxu1 %vm493_vm6, %v727_v58  ;;  %v710_v58 = vsel %vm529_vm5, %v705_v57, 0 }
 0x3c6   : > { %719 = vmatpush.bf16.msra.mxu0 %v710_v58 }
 0x431   : > { %v673_v40 = vpop.xlane.xlu2 %672 }
 0x432   : > { %v643_v28 = vpop.f32.mrf.mxu1  ;;  %v674_v44 = vsub.f32 %v670_v22, %v673_v40 }
 0x434   : > { %v675_v48 = vmul.f32 1.442695, %v674_v44  ;;  %v1179_v44 = vld [vmem:[%s1593_s7] ss:$0 sm:$0xff] }
 0x437   : > { %v601_v30 = vpop.f32.mrf.mxu2 }
 0x438   : > { %v606_v31 = vmul.f32 %v1193_v29, %v601_v30  ;;  %v1122_v29 = vld [vmem:[%s1596_s10 + $0x30] sm:$0xff] }
 0x439   : > { %951 = vmatpush.bf16.msra.mxu1 %v1122_v29 }
 0x43a   : > { %v607_v32 = vpack.c.bf16 %v606_v31, %v606_v31  ;;  %v645_v34 = vpop.f32.mrf.mxu1  ;;  %v1121_v31 = vld [vmem:[%s1596_s10 + $0x28] sm:$0xff] }
 0x43c   : > { %1059 = vmatmul.msk.bf16.vlgmr.msrb.gmra.mxu0 %vm493_vm6, %v607_v32  ;;  %v1120_v32 = vld [vmem:[%s1596_s10 + $0x20] sm:$0xff] }
 0x43d   : > { %952 = vmatpush.bf16.msra.mxu1 %v1121_v31 }
 0x43f   : > { %v603_v35 = vpop.f32.mrf.mxu2 }
 0x441   : > { %953 = vmatpush.bf16.msra.mxu1 %v1120_v32 }
 0x442   : > { %v745_v36 = vpop.f32.mrf.mxu1 }
 0x443   : > { %v749_v37 = vsel %vm488_vm7, %v745_v36, -inf }
 0x444   : > { %v750_v38 = vsel %vm493_vm6, %v749_v37, -inf }
 0x445   : > { %751 = vmax.xlane.f32.xlu1 %v750_v38  ;;  %v1118_v38 = vld [vmem:[%s1596_s10 + $0x10] sm:$0xff] }
 0x44a   : > { %v747_v39 = vpop.f32.mrf.mxu1 }
 0x45e   : > { %681 = vrot.lane.b32.xlu1 %v1421_v33, %s1279_s15  ;;  %s1220_s15 = scalar_lea.hbm %s1219_s2, 8 }
 0x45f   : > { %p1221_p11 = scmp.ne.s32.totalorder %s1219_s2, %s1220_s15  ;;  %p1226_p1 = scmp.lt.s32.totalorder %s1224_s28, %s1220_s15 }
 0x461   : > { %p1222_p12 = pnand %p1221_p11, %p1383_p5  ;;  %p1227_p2 = por %p1226_p1, %p1225_p0 }
 0x463   : > { %p1223_p13 = pneg %p1222_p12 }
 0x465   : > { %p1228_p3 = pnand %p1227_p2, %p1223_p13 }
 0x4b8   : > { %v752_v41 = vpop.xlane.xlu1 %751 }
 0x4b9   : > { %v753_v42 = vsub.f32 %v749_v37, %v752_v41  ;;  %v624_v43 = vpop.f32.mrf.mxu0  ;;  %v1178_v41 = vld [vmem:[%s1592_s6] ss:$0 sm:$0xff] }
 0x4ba   : > { %v644_v10 = vadd.f32 %v643_v28, %v624_v43 }
 0x4bb   : > { %v754_v47 = vmul.f32 1.442695, %v753_v42 }
 0x4bd   : > { %1194 = vpow2.f32 %v754_v47 }
 0x4be   : > { %1196 = vpow2.f32 %v675_v48 }
 0x4c1   : > { %v626_v49 = vpop.f32.mrf.mxu0 }
 0x4c3   : > { %v1195_v50 = vpop.eup %1194 }
 0x4c4   : > { %v759_v45 = vpack.c.bf16 %v1195_v50, %v1195_v50  ;;  %v756_v46 = vsel %vm493_vm6, %v1195_v50, 0.0  ;;  %v1197_v51 = vpop.eup %1196  ;;  %v1117_v50 = vld [vmem:[%s1596_s10 + $0x8] sm:$0xff] }
 0x4c5   : > { %757 = vadd.xlane.f32.xlu2 %v756_v46  ;;  %v677_v33 = vsel %vm493_vm6, %v1197_v51, 0.0  ;;  %v680_v54 = vpack.c.bf16 %v1197_v51, %v1197_v51  ;;  %v1180_v46 = vld [vmem:[%s1595_s9] ss:$0 sm:$0xff] }
 0x4c6   : > { %1065 = vmatmul.msk.bf16.vlgmr.msrb.gmra.mxu3 %vm493_vm6, %v759_v45  ;;  %v1116_v45 = vld [vmem:[%s1596_s10] sm:$0xff] }
 0x4cd   : > { %678 = vadd.xlane.f32.xlu2 %v677_v33 }
 0x4d0   : > { %v682_v52 = vpop.permute.xlu1 %681 }
 0x4d1   : > { %v687_v53 = vsel %vm529_vm5, %v682_v52, 0 }
 0x4d2   : > { %696 = vmatpush.bf16.msra.mxu2 %v687_v53 }
 0x4d5   : > { %1062 = vmatmul.msk.bf16.vlgmr.msra.gmra.mxu2 %vm493_vm6, %v680_v54 }
 0x4d6   : > { %798 = vmatpush.bf16.msrb.mxu2 %v789_v56 }
 0x538   : > { %v758_v59 = vpop.xlane.xlu2 %757 }
 0x539   : > { %1198 = vrcp.f32 %v758_v59 }
 0x53f   : > { %v1199_v60 = vpop.eup %1198 }
 0x540   : > { %v679_v1 = vpop.xlane.xlu2 %678 }
 0x541   : > { %1200 = vrcp.f32 %v679_v1 }
 0x547   : > { %v1201_v3 = vpop.eup %1200 }
 0x549   : > { %v777_v61 = vpop.f32.mrf.mxu3 }
 0x54a   : > { %v782_v62 = vmul.f32 %v1199_v60, %v777_v61 }
 0x54c   : > { %v783_v63 = vpack.c.bf16 %v782_v62, %v782_v62 }
 0x54e   : > { %1066 = vmatmul.msk.bf16.vlgmr.msrb.gmra.mxu2 %vm493_vm6, %v783_v63 }
 0x551   : > { %v779_v2 = vpop.f32.mrf.mxu3 }
 0x558   : > { %v698_v4 = vpop.f32.mrf.mxu2 }
 0x559   : > { %v703_v5 = vmul.f32 %v1201_v3, %v698_v4 }
 0x55b   : > { %v704_v6 = vpack.c.bf16 %v703_v5, %v703_v5 }
 0x55d   : > { %1063 = vmatmul.msk.bf16.vlgmr.msra.gmra.mxu0 %vm493_vm6, %v704_v6 }
 0x560   : > { %v700_v7 = vpop.f32.mrf.mxu2 }
 0x5d1   : > { %v800_v9 = vpop.f32.mrf.mxu2 }
 0x5d9   : > { %v802_v11 = vpop.f32.mrf.mxu2 }
 0x5da   : > { %v721_v12 = vpop.f32.mrf.mxu0 }
 0x5db   : > { %v725_v13 = vadd.f32 %v721_v12, %v644_v10 }
 0x5dd   : > { %v804_v14 = vadd.f32 %v800_v9, %v725_v13 }
 0x5df   : > { %v805_v16 = vadd.f32 %v804_v14, %v1398_v0  ;;  %v1115_v0 = vld [vmem:[%s1594_s8 + $0x8] sm:$0xff] }
 0x5e0   : > { %873 = vmatpush.bf16.msrb.mxu0 %v1115_v0 }
 0x5e1   : > { %v1501_v17 = vadd.f32 %v1177_v15, %v805_v16 }
 0x5e2   : > { %v723_v18 = vpop.f32.mrf.mxu0 }
 0x5e3   : > { %v811_v19 = vsel %vm411_vm0, %v1501_v17, 0.0 }
 0x5e4   : > { %812 = vadd.xlane.f32.xlu2 %v811_v19  ;;  %874 = vmatpush.bf16.msrb.mxu0 %v1114_v25 }
 0x657   : > { %v813_v20 = vpop.xlane.xlu2 %812 }
 0x658   : > { %v814_v21 = vmul.f32 %v813_v20, %v1402_v8 }
 0x65a   : > { %v815_v22 = vsub.f32 %v1501_v17, %v814_v21 }
 0x65c   : > { %v816_v23 = vmul.f32 %v815_v22, %v815_v22 }
 0x65e   : > { %v817_v24 = vsel %vm411_vm0, %v816_v23, 0.0 }
 0x65f   : > { %818 = vadd.xlane.f32.xlu1 %v817_v24 }
 0x6d2   : > { %v819_v27 = vpop.xlane.xlu1 %818 }
 0x6d3   : > { %v820_v28 = vmul.f32 %v819_v27, %v1402_v8  ;;  %v1119_v8 = vld [vmem:[%s1596_s10 + $0x18] sm:$0xff] }
 0x6d4   : > { %954 = vmatpush.bf16.msra.mxu1 %v1119_v8 }
 0x6d5   : > { %v821_v30 = vadd.f32 1e-05, %v820_v28 }
 0x6d7   : > { %1202 = vrsqrt.f32 %v821_v30  ;;  %vm828_vm9 = vweird.f32 %v821_v30 }
 0x6d8   : > { %955 = vmatpush.bf16.msra.mxu1 %v1118_v38 }
 0x6dc   : > { %956 = vmatpush.bf16.msra.mxu1 %v1117_v50 }
 0x6dd   : > { %v1203_v34 = vpop.eup %1202 }
 0x6de   : > { %v823_v35 = vmul.f32 %v1203_v34, %v821_v30  ;;  %vm829_vm8 = vweird.f32 %v1203_v34 }
 0x6df   : > { %vm830_vm10 = vmor %vm828_vm9, %vm829_vm8 }
 0x6e0   : > { %v824_v36 = vmul.f32 %v1203_v34, %v823_v35  ;;  %957 = vmatpush.bf16.msra.mxu1 %v1116_v45 }
 0x6e2   : > { %v825_v37 = vmul.f32 0.5, %v824_v36 }
 0x6e4   : > { %v826_v39 = vsub.f32 1.5, %v825_v37 }
 0x6e6   : > { %v827_v40 = vmul.f32 %v1203_v34, %v826_v39 }
 0x6e8   : > { %v831_v42 = vsel %vm830_vm10, %v1203_v34, %v827_v40 }
 0x6e9   : > { %v832_v43 = vmul.f32 %v831_v42, %v815_v22 }
 0x6eb   : > { %v837_v47 = vmul.f32 %v1178_v41, %v832_v43 }
 0x6ed   : > { %v842_v48 = vadd.f32 %v1179_v44, %v837_v47 }
 0x6ef   : > { %v843_v49 = vpack.c.bf16 %v842_v48, %v842_v48 }
 0x6f1   : > { %1075 = vmatmul.msk.bf16.vlgmr.msrb.gmra.mxu0 %vm411_vm0, %v843_v49 }
 0x76e   : > { %v876_v51 = vpop.f32.mrf.mxu0 }
 0x76f   : > { %v877_v33 = vadd.f32 %v1180_v46, %v876_v51 }
 0x771   : > { %v880_v52 = vmax.f32 %v877_v33, 0.0 }
 0x773   : > { %v881_v53 = vpack.c.bf16 %v880_v52, %v880_v52 }
 0x775   : > { %958 = vmatmul.bf16.vlgmr.msra.gmra.mxu1 %v881_v53 }
 0x776   : > { %v878_v54 = vpop.f32.mrf.mxu0 }
 0x7f2   : > { %v959_v56 = vpop.f32.mrf.mxu1 }
 0x7f3   : > { %v960_v57 = vadd.f32 %v1181_v55, %v959_v56 }
 0x7f5   : > { %v963_v58 = vadd.f32 %v960_v57, %v1501_v17 }
 0x7f7   : > { %964 = vst.msk [vmem:[%s404_s19] sm:$0xff] %vm411_vm0, %v963_v58 }
 0x7f8   : > { %1231 = shalt.err (!%p1228_p3)
}
 0x7f9   : > { %1124 = dma.vmem_to_hbm [thread:$0]  (%p1383_p5), %s979_s20, 128, %s981_s1, %s966_s25  }
 0x7fa   : > { %v961_v59 = vpop.f32.mrf.mxu1 }
 0x7fb PF: > { %p1130_p4 = scmp.ge.s32.totalorder %s1266_s24, 2  ;;  %s992_s26 = sand.u32 1, %s1254_s21  }
 0x7fc   : > { %s993_s18 = scalar_lea.sflag [#allocation3], %s992_s26 }
 0x7fd   : > { %p1127_p7 = pnand %p1130_p4, %p1387_p6 }
 0x7ff   : > { %p1128_p8 = pneg %p1127_p7 }
 0x801   : > { %1249 = dma.done.wait (%p1128_p8), %s993_s18, 128  }
 0x802   : > { %1251 = vsyncadd (%p1128_p8), %s993_s18, 4294967168  ;;  %p22_p9 = scmp.ge.s32.totalorder %s1370_s27, 4   ;;  %s1607_s21 = smov %s1258_s22 }
 0x803   : > { %s1608_s22 = smov %s1262_s23  ;;  %s1609_s23 = smov %s1381_s30 }
 0x804   : > { %s1610_s24 = smov %s1370_s27  ;;  %24 = sbr.rel (!%p22_p9) target bundleno = 7 (0x7), region = 103 }
 0x809   :  { %999 = vsyncpa [#allocation3], 1 }
 0x80a   :  { %1001 = vsyncpa [#allocation3 + $0x1], 1 }

</bundles_post_ra>
